<compile_context>
chip_gen: v5e
topology: v5e:2x2
jax: 0.10.0
libtpu: 0.0.40
codegen_flags: <defaults>
</compile_context>

<pallas_src>
import functools

import jax
import jax.numpy as jnp
from jax.experimental import pallas as pl
from jax.experimental.pallas import tpu as pltpu

L_CENT = 50.0          # col.BaseColor.l_cent
L_NORM = 100.0         # col.BaseColor.l_norm
AB_NORM = 110.0        # col.BaseColor.ab_norm
NUM_CLASSES = 313
PATCH = 4              # stand-in backbone downsamples by 4, like eccv16
C_PAD = ((NUM_CLASSES + 15) // 16) * 16   # 320: class dim is on sublanes (x16 for bf16)


# ---------------------------------------------------------------------------
# Fused kernel: backbone matmul + softmax + temporal (tk,1,1) head
# ---------------------------------------------------------------------------
def _fused_kernel(x_ref, wk_ref, b_ref, wh_ref, o_ref, *, tk, t_out):
    """Grid (N, P_pad//TP, T); T is the trailing "arbitrary" (accumulation) axis.

    x_ref : (K, TP)        bf16  raw L-channel 4x4 patches of frame t (P tile on lanes)
    wk_ref: (C_pad, K)     bf16  backbone weights (normalize_l already folded in)
    b_ref : (C_pad, 1)     f32   backbone bias (padded classes = -1e9 -> softmax weight 0)
    wh_ref: (2*tk, C_pad)  bf16  fused head taps, row 2*dt + o = AB_NORM * W[o, :, dt]
    o_ref : (t_out, 2, TP) f32   ab output accumulator, resident across the t axis
    """
    t = pl.program_id(2)

    @pl.when(t == 0)
    def _init():
        o_ref[...] = jnp.zeros_like(o_ref)

    # Backbone stand-in: per-frame 4x4/stride-4 patch conv -> class logits (f32 acc).
    z = jnp.dot(wk_ref[...], x_ref[...], preferred_element_type=jnp.float32)
    z = z + b_ref[...]                                               # (C_pad, TP)

    # Softmax over classes (axis 0); normalisation deferred to one reciprocal-mul
    # after the tap projection (both are linear in e).  Reductions stay f32.
    z = z - jnp.max(z, axis=0, keepdims=True)
    e = jnp.exp(z)                                                   # (C_pad, TP) f32
    inv = pl.reciprocal(jnp.sum(e, axis=0, keepdims=True), approx=True)   # (1, TP)

    # All tk temporal taps of the Conv3d head in one bf16 MXU pass; AB_NORM is
    # pre-folded into wh.
    proj = jnp.dot(wh_ref[...], e.astype(jnp.bfloat16),
                   preferred_element_type=jnp.float32) * inv         # (2*tk, TP) f32

    # Temporal (tk,1,1) conv as a scatter into the resident accumulator:
    #   out[t0] += W[:, :, t - t0] @ softmax_t    for t0 = t - dt in range.
    for dt in range(tk):
        t0 = t - dt

        @pl.when(jnp.logical_and(t0 >= 0, t0 < t_out))
        def _acc(t0=t0, dt=dt):
            o_ref[t0] += proj[2 * dt:2 * dt + 2, :]


# ---------------------------------------------------------------------------
# Wrapper
# ---------------------------------------------------------------------------
def colornet3d_1layer_forward(inputs, kparams, *, temp_conv_size):
    """inputs (N, 1, T, H, W) f32 -> ab (N, 2, T, H, W) f32 (already unnormalized)."""
    N, Cin, T, H, W = inputs.shape
    assert Cin == 1
    assert H % PATCH == 0 and W % PATCH == 0, "stand-in backbone needs H, W % 4 == 0"
    tk = temp_conv_size
    assert T >= tk, "need at least temp_conv_size frames"
    t_out = T - tk + 1

    Hf, Wf = H // PATCH, W // PATCH
    P = Hf * Wf
    K = PATCH * PATCH
    P_pad = ((P + 127) // 128) * 128          # lane-dense stores (>=128 lanes)

    w_k = kparams["w_patch"]                  # (C_PAD, K)     bf16
    b_k = kparams["b_patch"]                  # (C_PAD, 1)     f32
    w_all = kparams["w_all"]                  # (2*tk, C_PAD)  bf16
    C_pad = w_k.shape[0]

    # Wrapper-side layout plumbing: channels-major 4x4 patches, spatial axis P on
    # lanes, bf16 (halves the only HBM read that scales with resolution).
    xf = inputs[:, 0].reshape(N, T, Hf, PATCH, Wf, PATCH)
    patches = xf.transpose(0, 1, 3, 5, 2, 4).reshape(N, T, K, P)
    patches = jnp.pad(patches, ((0, 0), (0, 0), (0, 0), (0, P_pad - P)))
    patches = patches.astype(jnp.bfloat16)

    # Lane tile: largest of {512, 256, 128} dividing P_pad.  Per-step VMEM stays
    # ~1-2 MiB, comfortably within v5e/v6e (128 MiB) and v7x (64 MiB) budgets.
    if P_pad % 512 == 0:
        TP = 512
    elif P_pad % 256 == 0:
        TP = 256
    else:
        TP = 128

    kernel = functools.partial(_fused_kernel, tk=tk, t_out=t_out)
    ab_small = pl.pallas_call(
        kernel,
        out_shape=jax.ShapeDtypeStruct((N, t_out, 2, P_pad), jnp.float32),
        grid=(N, P_pad // TP, T),
        in_specs=[
            # per-frame patch tile (batch/time dims squeezed out of the kernel ref)
            pl.BlockSpec((None, None, K, TP), lambda n, pb, t: (n, t, 0, pb)),
            # weights/bias stay resident (constant block index)
            pl.BlockSpec((C_pad, K), lambda n, pb, t: (0, 0)),
            pl.BlockSpec((C_pad, 1), lambda n, pb, t: (0, 0)),
            pl.BlockSpec((2 * tk, C_pad), lambda n, pb, t: (0, 0)),
        ],
        # output block constant across t -> accumulator resident in VMEM, written
        # back to HBM once per (n, pb) as a lane-dense slab.
        out_specs=pl.BlockSpec((None, t_out, 2, TP), lambda n, pb, t: (n, 0, 0, pb)),
        compiler_params=pltpu.CompilerParams(
            dimension_semantics=("parallel", "parallel", "arbitrary")),
    )(patches, w_k, b_k, w_all)

    # Drop the lane padding and restore (N, 2, T_out, Hf, Wf).
    ab_small = ab_small[:, :, :, :P].reshape(N, t_out, 2, Hf, Wf)
    ab_small = jnp.transpose(ab_small, (0, 2, 1, 3, 4))

    # TODO(synk): jax.image.resize 'trilinear' ~ F.interpolate(align_corners=False);
    # edge conventions differ slightly, especially along T where T_out < T.
    ab = jax.image.resize(ab_small, (N, 2, T, H, W), method="trilinear")
    assert ab.shape == (N, 2, T, H, W), "Wrong shape of the logits"
    return ab


# ---------------------------------------------------------------------------
# Parameter construction (PyTorch-like) and one-time kernel-param preparation
# ---------------------------------------------------------------------------
def init_params(key, temp_conv_size):
    k1, k2, k3 = jax.random.split(key, 3)
    K = PATCH * PATCH
    # Stand-in backbone weights (deterministic), conv-style (C_out, C_in*kh*kw).
    w_patch = jax.random.normal(k1, (NUM_CLASSES, K), jnp.float32) * 0.1
    b_patch = jax.random.normal(k2, (NUM_CLASSES,), jnp.float32) * 0.01
    # Analogue of model_out.weight (2, 313, 1, 1): repeated over the tk temporal
    # taps and divided by temp_conv_size, exactly as in init_backbone().
    w_out = jax.random.normal(k3, (2, NUM_CLASSES), jnp.float32) * 0.1
    w_head = jnp.tile(w_out[:, :, None], (1, 1, temp_conv_size)) / temp_conv_size
    return {"w_patch": w_patch, "b_patch": b_patch, "w_head": w_head}


def prepare_params(params, temp_conv_size):
    """Fold normalize_l + unnormalize_ab, pad classes 313 -> 320, fuse head taps, cast bf16."""
    w = params["w_patch"]                         # (C, K) f32
    b = params["b_patch"]                         # (C,)   f32
    wh = params["w_head"]                         # (2, C, tk) f32
    C, _ = w.shape
    tk = temp_conv_size
    pad = C_PAD - C

    # W @ ((x - L_CENT)/L_NORM) + b  ==  (W/L_NORM) @ x + (b - (L_CENT/L_NORM)*rowsum(W))
    w_f = w / L_NORM
    b_f = b - (L_CENT / L_NORM) * jnp.sum(w, axis=1)

    # Pad the class dim 313 -> 320; padded logits get a -1e9 bias so exp == 0 in
    # the softmax (and the padded head-weight columns are zero).
    w_k = jnp.pad(w_f, ((0, pad), (0, 0))).astype(jnp.bfloat16)
    b_k = jnp.pad(b_f, ((0, pad),), constant_values=-1e9).reshape(C_PAD, 1)

    # Fuse the tk temporal taps into one (2*tk, C_PAD) matrix, row 2*dt + o =
    # W[o, :, dt], and fold unnormalize_ab (*AB_NORM) in (commutes with the
    # linear temporal conv and trilinear interpolation).
    w_all = jnp.transpose(wh, (2, 0, 1)).reshape(2 * tk, C) * AB_NORM
    w_all = jnp.pad(w_all, ((0, 0), (0, pad))).astype(jnp.bfloat16)
    return {"w_patch": w_k, "b_patch": b_k, "w_all": w_all}


if __name__ == "__main__":
    key = jax.random.PRNGKey(0)
    kp, kx = jax.random.split(key)

    temp_conv_size = 3
    N, T, H, W = 2, 8, 16, 16

    params = init_params(kp, temp_conv_size)
    kparams = prepare_params(params, temp_conv_size)
    # L channel values roughly in [0, 100].
    inputs = jax.random.uniform(kx, (N, 1, T, H, W), jnp.float32, 0.0, 100.0)

    fwd = jax.jit(functools.partial(colornet3d_1layer_forward,
                                    temp_conv_size=temp_conv_size))
    out = fwd(inputs, kparams)
    jax.block_until_ready(out)
    assert out.shape == (N, 2, T, H, W)
    print("KERNEL_OK")
</pallas_src>

<mosaic_0001>
module attributes {stable_mosaic.version = 11 : i64} {
  func.func @_fused_kernel(%arg0: i32, %arg1: i32, %arg2: i32, %arg3: memref<1x1x16x128xbf16, #tpu.memory_space<vmem>>, %arg4: memref<320x16xbf16, #tpu.memory_space<vmem>>, %arg5: memref<320x1xf32, #tpu.memory_space<vmem>>, %arg6: memref<6x320xbf16, #tpu.memory_space<vmem>>, %arg7: memref<1x6x2x128xf32, #tpu.memory_space<vmem>>) attributes {dimension_semantics = [#tpu.dimension_semantics<parallel>, #tpu.dimension_semantics<parallel>, #tpu.dimension_semantics<arbitrary>], iteration_bounds = array<i64: 2, 1, 8>, scalar_prefetch = 0 : i64, scratch_operands = 0 : i64, tpu.core_type = #tpu.core_type<tc>, window_params = [{transform_indices = @transform_0, window_bounds = array<i64: 1, 1, 16, 128>}, {pipeline_mode = #tpu.pipeline_mode<synchronous>, transform_indices = @transform_1, window_bounds = array<i64: 320, 16>}, {pipeline_mode = #tpu.pipeline_mode<synchronous>, transform_indices = @transform_2, window_bounds = array<i64: 320, 1>}, {pipeline_mode = #tpu.pipeline_mode<synchronous>, transform_indices = @transform_3, window_bounds = array<i64: 6, 320>}, {transform_indices = @transform_4, window_bounds = array<i64: 1, 6, 2, 128>}]} {
    %c0_i32 = arith.constant 0 : i32
    %0 = arith.cmpi eq, %arg2, %c0_i32 : i32
    %1 = arith.extui %0 : i1 to i32
    %c0_i32_0 = arith.constant 0 : i32
    %2 = arith.cmpi ne, %1, %c0_i32_0 : i32
    scf.if %2 {
      %cst_22 = arith.constant 0.000000e+00 : f32
      %41 = vector.broadcast %cst_22 : f32 to vector<6x2x128xf32>
      %c0_23 = arith.constant 0 : index
      %c0_24 = arith.constant 0 : index
      %c0_25 = arith.constant 0 : index
      %c0_26 = arith.constant 0 : index
      %42 = vector.load %arg7[%c0_23, %c0_24, %c0_25, %c0_26] : memref<1x6x2x128xf32, #tpu.memory_space<vmem>>, vector<1x6x2x128xf32>
      %43 = vector.shape_cast %42 : vector<1x6x2x128xf32> to vector<6x2x128xf32>
      %44 = vector.shape_cast %41 : vector<6x2x128xf32> to vector<1x6x2x128xf32>
      tpu.vector_store %arg7[%c0_23, %c0_24, %c0_25, %c0_26], %44 {strides = array<i32>} : memref<1x6x2x128xf32, #tpu.memory_space<vmem>>, vector<1x6x2x128xf32>,
    } else {
    }
    %c0 = arith.constant 0 : index
    %c0_1 = arith.constant 0 : index
    %3 = vector.load %arg4[%c0, %c0_1] : memref<320x16xbf16, #tpu.memory_space<vmem>>, vector<320x16xbf16>
    %c0_2 = arith.constant 0 : index
    %c0_3 = arith.constant 0 : index
    %c0_4 = arith.constant 0 : index
    %c0_5 = arith.constant 0 : index
    %4 = vector.load %arg3[%c0_2, %c0_3, %c0_4, %c0_5] : memref<1x1x16x128xbf16, #tpu.memory_space<vmem>>, vector<1x1x16x128xbf16>
    %5 = vector.shape_cast %4 : vector<1x1x16x128xbf16> to vector<16x128xbf16>
    %cst = arith.constant dense<0.000000e+00> : vector<320x128xf32>
    %6 = tpu.matmul %3, %5, %cst {dimension_numbers = #tpu.dot_dimension_numbers<[1], [0], [0], [1], [0, 0, 1, 1], [], []>} : vector<320x16xbf16>, vector<16x128xbf16>, vector<320x128xf32> -> vector<320x128xf32>
    %c0_6 = arith.constant 0 : index
    %c0_7 = arith.constant 0 : index
    %7 = vector.load %arg5[%c0_6, %c0_7] : memref<320x1xf32, #tpu.memory_space<vmem>>, vector<320x1xf32>
    %8 = vector.broadcast %7 : vector<320x1xf32> to vector<320x128xf32>
    %9 = arith.addf %6, %8 : vector<320x128xf32>
    %cst_8 = arith.constant dense<0xFF800000> : vector<128xf32>
    %10 = vector.multi_reduction <maximumf>, %9, %cst_8 [0] : vector<320x128xf32> to vector<128xf32>
    %11 = vector.shape_cast %10 : vector<128xf32> to vector<1x128xf32>
    %12 = vector.broadcast %11 : vector<1x128xf32> to vector<320x128xf32>
    %13 = arith.subf %9, %12 : vector<320x128xf32>
    %14 = math.exp %13 : vector<320x128xf32>
    %cst_9 = arith.constant dense<0.000000e+00> : vector<128xf32>
    %15 = vector.multi_reduction <add>, %14, %cst_9 [0] : vector<320x128xf32> to vector<128xf32>
    %16 = vector.shape_cast %15 : vector<128xf32> to vector<1x128xf32>
    %17 = tpu.reciprocal %16 {approx = true} : vector<1x128xf32> -> vector<1x128xf32>
    %c0_10 = arith.constant 0 : index
    %c0_11 = arith.constant 0 : index
    %18 = vector.load %arg6[%c0_10, %c0_11] : memref<6x320xbf16, #tpu.memory_space<vmem>>, vector<6x320xbf16>
    %19 = arith.truncf %14 : vector<320x128xf32> to vector<320x128xbf16>
    %cst_12 = arith.constant dense<0.000000e+00> : vector<6x128xf32>
    %20 = tpu.matmul %18, %19, %cst_12 {dimension_numbers = #tpu.dot_dimension_numbers<[1], [0], [0], [1], [0, 0, 1, 1], [], []>} : vector<6x320xbf16>, vector<320x128xbf16>, vector<6x128xf32> -> vector<6x128xf32>
    %21 = vector.broadcast %17 : vector<1x128xf32> to vector<6x128xf32>
    %22 = arith.mulf %20, %21 : vector<6x128xf32>
    %c0_i32_13 = arith.constant 0 : i32
    %23 = arith.subi %arg2, %c0_i32_13 : i32
    %c0_i32_14 = arith.constant 0 : i32
    %24 = arith.cmpi sge, %23, %c0_i32_14 : i32
    %c6_i32 = arith.constant 6 : i32
    %25 = arith.cmpi slt, %23, %c6_i32 : i32
    %26 = arith.andi %24, %25 : i1
    %27 = arith.extui %26 : i1 to i32
    %c0_i32_15 = arith.constant 0 : i32
    %28 = arith.cmpi ne, %27, %c0_i32_15 : i32
    scf.if %28 {
      %c0_22 = arith.constant 0 : index
      %41 = arith.index_cast %23 : i32 to index
      %c0_23 = arith.constant 0 : index
      %c0_24 = arith.constant 0 : index
      %42 = vector.load %arg7[%c0_22, %41, %c0_23, %c0_24] : memref<1x6x2x128xf32, #tpu.memory_space<vmem>>, vector<1x1x2x128xf32>
      %43 = vector.shape_cast %42 : vector<1x1x2x128xf32> to vector<2x128xf32>
      %44 = vector.extract_strided_slice %22 {offsets = [0, 0], sizes = [2, 128], strides = [1, 1]} : vector<6x128xf32> to vector<2x128xf32>
      %45 = arith.addf %43, %44 : vector<2x128xf32>
      %c0_25 = arith.constant 0 : index
      %46 = arith.index_cast %23 : i32 to index
      %c0_26 = arith.constant 0 : index
      %c0_27 = arith.constant 0 : index
      %47 = vector.load %arg7[%c0_25, %46, %c0_26, %c0_27] : memref<1x6x2x128xf32, #tpu.memory_space<vmem>>, vector<1x1x2x128xf32>
      %48 = vector.shape_cast %47 : vector<1x1x2x128xf32> to vector<2x128xf32>
      %49 = vector.shape_cast %45 : vector<2x128xf32> to vector<1x1x2x128xf32>
      tpu.vector_store %arg7[%c0_25, %46, %c0_26, %c0_27], %49 {strides = array<i32>} : memref<1x6x2x128xf32, #tpu.memory_space<vmem>>, vector<1x1x2x128xf32>,
    } else {
    }
    %c1_i32 = arith.constant 1 : i32
    %29 = arith.subi %arg2, %c1_i32 : i32
    %c0_i32_16 = arith.constant 0 : i32
    %30 = arith.cmpi sge, %29, %c0_i32_16 : i32
    %c6_i32_17 = arith.constant 6 : i32
    %31 = arith.cmpi slt, %29, %c6_i32_17 : i32
    %32 = arith.andi %30, %31 : i1
    %33 = arith.extui %32 : i1 to i32
    %c0_i32_18 = arith.constant 0 : i32
    %34 = arith.cmpi ne, %33, %c0_i32_18 : i32
    scf.if %34 {
      %c0_22 = arith.constant 0 : index
      %41 = arith.index_cast %29 : i32 to index
      %c0_23 = arith.constant 0 : index
      %c0_24 = arith.constant 0 : index
      %42 = vector.load %arg7[%c0_22, %41, %c0_23, %c0_24] : memref<1x6x2x128xf32, #tpu.memory_space<vmem>>, vector<1x1x2x128xf32>
      %43 = vector.shape_cast %42 : vector<1x1x2x128xf32> to vector<2x128xf32>
      %44 = vector.extract_strided_slice %22 {offsets = [2, 0], sizes = [2, 128], strides = [1, 1]} : vector<6x128xf32> to vector<2x128xf32>
      %45 = arith.addf %43, %44 : vector<2x128xf32>
      %c0_25 = arith.constant 0 : index
      %46 = arith.index_cast %29 : i32 to index
      %c0_26 = arith.constant 0 : index
      %c0_27 = arith.constant 0 : index
      %47 = vector.load %arg7[%c0_25, %46, %c0_26, %c0_27] : memref<1x6x2x128xf32, #tpu.memory_space<vmem>>, vector<1x1x2x128xf32>
      %48 = vector.shape_cast %47 : vector<1x1x2x128xf32> to vector<2x128xf32>
      %49 = vector.shape_cast %45 : vector<2x128xf32> to vector<1x1x2x128xf32>
      tpu.vector_store %arg7[%c0_25, %46, %c0_26, %c0_27], %49 {strides = array<i32>} : memref<1x6x2x128xf32, #tpu.memory_space<vmem>>, vector<1x1x2x128xf32>,
    } else {
    }
    %c2_i32 = arith.constant 2 : i32
    %35 = arith.subi %arg2, %c2_i32 : i32
    %c0_i32_19 = arith.constant 0 : i32
    %36 = arith.cmpi sge, %35, %c0_i32_19 : i32
    %c6_i32_20 = arith.constant 6 : i32
    %37 = arith.cmpi slt, %35, %c6_i32_20 : i32
    %38 = arith.andi %36, %37 : i1
    %39 = arith.extui %38 : i1 to i32
    %c0_i32_21 = arith.constant 0 : i32
    %40 = arith.cmpi ne, %39, %c0_i32_21 : i32
    scf.if %40 {
      %c0_22 = arith.constant 0 : index
      %41 = arith.index_cast %35 : i32 to index
      %c0_23 = arith.constant 0 : index
      %c0_24 = arith.constant 0 : index
      %42 = vector.load %arg7[%c0_22, %41, %c0_23, %c0_24] : memref<1x6x2x128xf32, #tpu.memory_space<vmem>>, vector<1x1x2x128xf32>
      %43 = vector.shape_cast %42 : vector<1x1x2x128xf32> to vector<2x128xf32>
      %44 = vector.extract_strided_slice %22 {offsets = [4, 0], sizes = [2, 128], strides = [1, 1]} : vector<6x128xf32> to vector<2x128xf32>
      %45 = arith.addf %43, %44 : vector<2x128xf32>
      %c0_25 = arith.constant 0 : index
      %46 = arith.index_cast %35 : i32 to index
      %c0_26 = arith.constant 0 : index
      %c0_27 = arith.constant 0 : index
      %47 = vector.load %arg7[%c0_25, %46, %c0_26, %c0_27] : memref<1x6x2x128xf32, #tpu.memory_space<vmem>>, vector<1x1x2x128xf32>
      %48 = vector.shape_cast %47 : vector<1x1x2x128xf32> to vector<2x128xf32>
      %49 = vector.shape_cast %45 : vector<2x128xf32> to vector<1x1x2x128xf32>
      tpu.vector_store %arg7[%c0_25, %46, %c0_26, %c0_27], %49 {strides = array<i32>} : memref<1x6x2x128xf32, #tpu.memory_space<vmem>>, vector<1x1x2x128xf32>,
    } else {
    }
    return
  }
  func.func @transform_0(%arg0: i32, %arg1: i32, %arg2: i32) -> (i32, i32, i32, i32) {
    %c0_i32 = arith.constant 0 : i32
    %c0_i32_0 = arith.constant 0 : i32
    return %arg0, %arg2, %c0_i32, %arg1 : i32, i32, i32, i32
  }
  func.func @transform_1(%arg0: i32, %arg1: i32, %arg2: i32) -> (i32, i32) {
    %c0_i32 = arith.constant 0 : i32
    %c0_i32_0 = arith.constant 0 : i32
    %c0_i32_1 = arith.constant 0 : i32
    return %c0_i32, %c0_i32_0 : i32, i32
  }
  func.func @transform_2(%arg0: i32, %arg1: i32, %arg2: i32) -> (i32, i32) {
    %c0_i32 = arith.constant 0 : i32
    %c0_i32_0 = arith.constant 0 : i32
    %c0_i32_1 = arith.constant 0 : i32
    return %c0_i32, %c0_i32_0 : i32, i32
  }
  func.func @transform_3(%arg0: i32, %arg1: i32, %arg2: i32) -> (i32, i32) {
    %c0_i32 = arith.constant 0 : i32
    %c0_i32_0 = arith.constant 0 : i32
    %c0_i32_1 = arith.constant 0 : i32
    return %c0_i32, %c0_i32_0 : i32, i32
  }
  func.func @transform_4(%arg0: i32, %arg1: i32, %arg2: i32) -> (i32, i32, i32, i32) {
    %c0_i32 = arith.constant 0 : i32
    %c0_i32_0 = arith.constant 0 : i32
    %c0_i32_1 = arith.constant 0 : i32
    return %arg0, %c0_i32, %c0_i32_0, %arg1 : i32, i32, i32, i32
  }
}

</mosaic_0001>

<bundles_post_ra>
// kernel: colornet3d_1layer_forward.1
= control target key start
LH: loop header
LB: loop body
LE: loop exit
PB: predicated region body
PF: predicated region fallthrough
CT: control target
= control target key end

     0   :  { %s1589_s15 = smov 0   ;;  %s1591_s16 = smov 0   ;;  %s2235_s0 = inlined_call_operand.vmem [shape: bf16[2,8,16,128], index: 0, kind: input, shape index: {}]   ;;  %s2236_s1 = inlined_call_operand.vmem [shape: bf16[320,16], index: 1, kind: input, shape index: {}]   ;;  %s2237_s2 = inlined_call_operand.vmem [shape: f32[320,1], index: 2, kind: input, shape index: {}]   ;;  %s2238_s3 = inlined_call_operand.vmem [shape: bf16[6,320], index: 3, kind: input, shape index: {}]   ;;  %s2239_s4 = inlined_call_operand.vmem [shape: f32[2,6,2,128], index: 4, kind: output, shape index: {}]  }
   0x1   :  { %s1593_s17 = smov 0   ;;  %s1595_s18 = smov 0  }
   0x2   :  { %s1597_s19 = smov 0  }
   0x3 LB: > { %s26_s20 = sadd.s32 1, %s1552_s17  ;;  %s33_s21 = sadd.s32 1, %s1556_s18  ;;  %s1560_s19 = sphi %s1597_s19, %s14_s19   ;;  %s1556_s18 = sphi %s1595_s18, %s2244_s18   ;;  %s1552_s17 = sphi %s1593_s17, %s2243_s17   ;;  %s1548_s16 = sphi %s1591_s16, %s2242_s16   ;;  %s1544_s15 = sphi %s1589_s15, %s2241_s15  }
   0x4   : > { %p27_p0 = scmp.ge.s32.totalorder %s26_s20, 8  ;;  %p1252_p1 = scmp.ge.s32.totalorder %s1560_s19, 1 }
   0x5   : > { %p194_p2 = scmp.lt.s32.totalorder %s1560_s19, 17 }
   0x6   : > { %s2246_s20 = smov (%p27_p0, %s26_s20), 0  ;;  %s2248_s21 = smov (!%p27_p0, %s33_s21), %s1556_s18 }
   0x7   : > { %p195_p3 = pnand %p1252_p1, %p194_p2  ;;  %p35_p4 = scmp.ge.s32.totalorder %s2248_s21, 2 }
   0x8   : > { %p230_p5 = scmp.lt.s32.totalorder (!%p195_p3), %s1548_s16, 1  ;;  %p232_p6 = scmp.lt.s32.totalorder (!%p195_p3), %s1544_s15, 7 }
   0x9   : > { %s2250_s21 = smov (%p35_p4, %s2248_s21), 0  ;;  %198 = sbr.rel (%p195_p3) target bundleno = 531 (0x213), region = 36 }
   0xa   : > { %p1257_p7 = scmp.ne.s32.totalorder (!%p195_p3), %s1544_s15, 0 }
   0xe   : > { %s2252_s16 = smov (!%p230_p5, %s1548_s16), 1 }
   0xf   : > { %s233_s22 = scalar_select %p232_p6, %s1544_s15, 7 }
  0x10   : > { %s1254_s23 = sshll.u32 %s2252_s16, 4  ;;  %s1394_s24 = smul.u32 12, %s2252_s16 }
  0x11   : > { %s1253_s25 = sshll.u32 %s233_s22, 1  ;;  %254 = sbr.rel (%p1257_p7) target bundleno = 29 (0x1d), region = 40 }
  0x12   : > { %s239_s26 = sadd.s32 %s1254_s23, %s1253_s25  ;;  %s1626_s29 = scalar_lea.vmem %s2239_s4, %s1394_s24 }
  0x13   : > { %s1255_s30 = sshll.u32 %s239_s26, 2 }
  0x14   : > { %s241_s7 = scalar_lea.vmem %s2235_s0, %s1255_s30 }
  0x16   : > { %v1562_v0 = vmov 0.0  }
  0x17   : > { %255 = vst [vmem:[%s1626_s29] sm:$0x3] %v1562_v0 }
  0x18   : > { %256 = vst [vmem:[%s1626_s29 + $0x2] sm:$0x3] %v1562_v0 }
  0x19   : > { %257 = vst [vmem:[%s1626_s29 + $0x4] sm:$0x3] %v1562_v0 }
  0x1a   : > { %258 = vst [vmem:[%s1626_s29 + $0x6] sm:$0x3] %v1562_v0 }
  0x1b   : > { %259 = vst [vmem:[%s1626_s29 + $0x8] sm:$0x3] %v1562_v0 }
  0x1c   : > { %260 = vst [vmem:[%s1626_s29 + $0xa] sm:$0x3] %v1562_v0 }
  0x1d PF: > { %v307_v1 = vld [vmem:[%s2237_s2 + $0x20] sm:$0xff]  ;;  %v305_v2 = vld [vmem:[%s2237_s2 + $0x10] sm:$0xff]  ;;  %v1563_v4 = vmov 0   ;;  %v1377_v7 = vld [vmem:[%s2236_s1 + $0x38] sm:$0xff]  ;;  %vm649_vm0 = vcmask 130048   ;;  %vm1062_vm1 = vcmask 523264  }
  0x1e   : > { %v303_v3 = vld [vmem:[%s2237_s2] sm:$0xff]  ;;  %1439 = vset.pattern.permute.xlu2 %v1563_v4  ;;  %1438 = vset.pattern.permute.xlu1 %v1563_v4  ;;  %v1379_v8 = vld [vmem:[%s2236_s1 + $0x48] sm:$0xff]  ;;  %v1384_v9 = vld [vmem:[%s2236_s1 + $0x70] sm:$0xff]  ;;  %p1106_p8 = scmp.ge.s32.totalorder %s1544_s15, 0  ;;  %p1107_p9 = scmp.lt.s32.totalorder %s1544_s15, 6 }
  0x1f   : > { %v1390_v5 = vld [vmem:[%s241_s7] sm:$0xff]  ;;  %1437 = vset.pattern.permute.xlu0 %v1563_v4  ;;  %365 = vperm.xlu2 %1439, %v307_v1   ;;  %v308_v10 = vld [vmem:[%s2237_s2 + $0x28] sm:$0xff]  ;;  %v306_v11 = vld [vmem:[%s2237_s2 + $0x18] sm:$0xff] }
  0x20   : > { %355 = vperm.xlu1 %1438, %v305_v2   ;;  %345 = vperm.xlu0 %1437, %v303_v3   ;;  %v1370_v6 = vld [vmem:[%s2236_s1] sm:$0xff]  ;;  %v304_v12 = vld [vmem:[%s2237_s2 + $0x8] sm:$0xff]  ;;  %v310_v14 = vld [vmem:[%s2237_s2 + $0x38] sm:$0xff]  ;;  %p2207_p10 = pnand %p1107_p9, %p1106_p8 }
  0x21   : > { %717 = vmatpush.bf16.msra.mxu0 %v1390_v5  ;;  %1391 = vmatpush.bf16.msra.mxu1 %v1390_v5  ;;  %v311_v13 = vld [vmem:[%s2237_s2 + $0x40] sm:$0xff]  ;;  %v309_v15 = vld [vmem:[%s2237_s2 + $0x30] sm:$0xff]  ;;  %v1371_v16 = vld [vmem:[%s2236_s1 + $0x8] sm:$0xff]  ;;  %s1363_s25 = sshll.u32 (!%p2207_p10), %s1544_s15, 1 }
  0x22   : > { %1392 = vmatpush.bf16.msra.mxu2 %v1390_v5  ;;  %1393 = vmatpush.bf16.msra.mxu3 %v1390_v5  ;;  %v1378_v17 = vld [vmem:[%s2236_s1 + $0x40] sm:$0xff]  ;;  %v1380_v18 = vld [vmem:[%s2236_s1 + $0x50] sm:$0xff]  ;;  %v1385_v19 = vld [vmem:[%s2236_s1 + $0x78] sm:$0xff]  ;;  %s1113_s26 = scalar_lea.vmem (!%p2207_p10), %s1626_s29, %s1363_s25 }
  0x23   : > { %v314_v20 = vld [vmem:[%s2237_s2 + $0x58] sm:$0xff]  ;;  %v313_v21 = vld [vmem:[%s2237_s2 + $0x50] sm:$0xff]  ;;  %v312_v22 = vld [vmem:[%s2237_s2 + $0x48] sm:$0xff] }
  0x24   : > { %1342 = vmatmul.msk.bf16.vlgmr.msra.gmra.mxu0 %vm649_vm0, %v1370_v6  ;;  %1349 = vmatmul.msk.bf16.vlgmr.msra.gmra.mxu1 %vm649_vm0, %v1377_v7  ;;  %v317_v23 = vld [vmem:[%s2237_s2 + $0x70] sm:$0xff]  ;;  %v316_v24 = vld [vmem:[%s2237_s2 + $0x68] sm:$0xff]  ;;  %v315_v25 = vld [vmem:[%s2237_s2 + $0x60] sm:$0xff] }
  0x25   : > { %1351 = vmatmul.msk.bf16.vlgmr.msra.gmra.mxu2 %vm649_vm0, %v1379_v8  ;;  %1356 = vmatmul.msk.bf16.vlgmr.msra.gmra.mxu3 %vm649_vm0, %v1384_v9  ;;  %v1372_v26 = vld [vmem:[%s2236_s1 + $0x10] sm:$0xff]  ;;  %v1381_v27 = vld [vmem:[%s2236_s1 + $0x58] sm:$0xff]  ;;  %v1386_v28 = vld [vmem:[%s2236_s1 + $0x80] sm:$0xff] }
  0x26   : > { %v320_v29 = vld [vmem:[%s2237_s2 + $0x88] sm:$0xff]  ;;  %v319_v30 = vld [vmem:[%s2237_s2 + $0x80] sm:$0xff]  ;;  %v318_v31 = vld [vmem:[%s2237_s2 + $0x78] sm:$0xff] }
  0x27   : > { %370 = vperm.xlu2 %1439, %v308_v10   ;;  %v323_v32 = vld [vmem:[%s2237_s2 + $0xa0] sm:$0xff]  ;;  %v322_v33 = vld [vmem:[%s2237_s2 + $0x98] sm:$0xff]  ;;  %v321_v34 = vld [vmem:[%s2237_s2 + $0x90] sm:$0xff] }
  0x28   : > { %360 = vperm.xlu1 %1438, %v306_v11   ;;  %350 = vperm.xlu0 %1437, %v304_v12   ;;  %v1373_v35 = vld [vmem:[%s2236_s1 + $0x18] sm:$0xff]  ;;  %v1382_v36 = vld [vmem:[%s2236_s1 + $0x60] sm:$0xff]  ;;  %v1387_v37 = vld [vmem:[%s2236_s1 + $0x88] sm:$0xff] }
  0x29   : > { %v326_v38 = vld [vmem:[%s2237_s2 + $0xb8] sm:$0xff]  ;;  %v325_v39 = vld [vmem:[%s2237_s2 + $0xb0] sm:$0xff]  ;;  %v324_v40 = vld [vmem:[%s2237_s2 + $0xa8] sm:$0xff] }
  0x2a   : > { %v329_v41 = vld [vmem:[%s2237_s2 + $0xd0] sm:$0xff]  ;;  %v328_v42 = vld [vmem:[%s2237_s2 + $0xc8] sm:$0xff]  ;;  %v327_v43 = vld [vmem:[%s2237_s2 + $0xc0] sm:$0xff] }
  0x2b   : > { %v1374_v44 = vld [vmem:[%s2236_s1 + $0x20] sm:$0xff]  ;;  %v1383_v45 = vld [vmem:[%s2236_s1 + $0x68] sm:$0xff]  ;;  %v1388_v46 = vld [vmem:[%s2236_s1 + $0x90] sm:$0xff] }
  0x2c   : > { %v332_v47 = vld [vmem:[%s2237_s2 + $0xe8] sm:$0xff]  ;;  %v331_v48 = vld [vmem:[%s2237_s2 + $0xe0] sm:$0xff]  ;;  %v330_v49 = vld [vmem:[%s2237_s2 + $0xd8] sm:$0xff] }
  0x2d   : > { %v335_v50 = vld [vmem:[%s2237_s2 + $0x100] sm:$0xff]  ;;  %v334_v51 = vld [vmem:[%s2237_s2 + $0xf8] sm:$0xff]  ;;  %v333_v52 = vld [vmem:[%s2237_s2 + $0xf0] sm:$0xff] }
  0x2e   : > { %v1375_v53 = vld [vmem:[%s2236_s1 + $0x28] sm:$0xff]  ;;  %v1389_v54 = vld [vmem:[%s2236_s1 + $0x98] sm:$0xff]  ;;  %v337_v56 = vld [vmem:[%s2237_s2 + $0x110] sm:$0xff] }
  0x2f   : > { %385 = vperm.xlu2 %1439, %v311_v13   ;;  %v338_v55 = vld [vmem:[%s2237_s2 + $0x118] sm:$0xff]  ;;  %v336_v57 = vld [vmem:[%s2237_s2 + $0x108] sm:$0xff]  ;;  %v341_v59 = vld [vmem:[%s2237_s2 + $0x130] sm:$0xff] }
  0x30   : > { %380 = vperm.xlu1 %1438, %v310_v14   ;;  %375 = vperm.xlu0 %1437, %v309_v15   ;;  %v340_v60 = vld [vmem:[%s2237_s2 + $0x128] sm:$0xff]  ;;  %v339_v61 = vld [vmem:[%s2237_s2 + $0x120] sm:$0xff]  ;;  %v1376_v62 = vld [vmem:[%s2236_s1 + $0x30] sm:$0xff] }
  0x31   : > { %v342_v0 = vld [vmem:[%s2237_s2 + $0x138] sm:$0xff] }
  0x34   : > { %1343 = vmatmul.msk.bf16.gmra.mxu0 %vm649_vm0, %v1371_v16  ;;  %1350 = vmatmul.msk.bf16.gmra.mxu1 %vm649_vm0, %v1378_v17 }
  0x35   : > { %1352 = vmatmul.msk.bf16.gmra.mxu2 %vm649_vm0, %v1380_v18  ;;  %1357 = vmatmul.msk.bf16.gmra.mxu3 %vm649_vm0, %v1385_v19 }
  0x37   : > { %400 = vperm.xlu2 %1439, %v314_v20  }
  0x38   : > { %395 = vperm.xlu1 %1438, %v313_v21   ;;  %390 = vperm.xlu0 %1437, %v312_v22  }
  0x3f   : > { %415 = vperm.xlu2 %1439, %v317_v23  }
  0x40   : > { %410 = vperm.xlu1 %1438, %v316_v24   ;;  %405 = vperm.xlu0 %1437, %v315_v25  }
  0x44   : > { %1344 = vmatmul.msk.bf16.gmra.mxu0 %vm649_vm0, %v1372_v26 }
  0x45   : > { %1353 = vmatmul.msk.bf16.gmra.mxu2 %vm649_vm0, %v1381_v27  ;;  %1358 = vmatmul.msk.bf16.gmra.mxu3 %vm649_vm0, %v1386_v28 }
  0x47   : > { %430 = vperm.xlu2 %1439, %v320_v29  }
  0x48   : > { %425 = vperm.xlu1 %1438, %v319_v30   ;;  %420 = vperm.xlu0 %1437, %v318_v31  }
  0x4f   : > { %445 = vperm.xlu2 %1439, %v323_v32  }
  0x50   : > { %440 = vperm.xlu1 %1438, %v322_v33   ;;  %435 = vperm.xlu0 %1437, %v321_v34  }
  0x54   : > { %1345 = vmatmul.msk.bf16.gmra.mxu0 %vm649_vm0, %v1373_v35 }
  0x55   : > { %1354 = vmatmul.msk.bf16.gmra.mxu2 %vm649_vm0, %v1382_v36  ;;  %1359 = vmatmul.msk.bf16.gmra.mxu3 %vm649_vm0, %v1387_v37 }
  0x57   : > { %460 = vperm.xlu2 %1439, %v326_v38  }
  0x58   : > { %455 = vperm.xlu1 %1438, %v325_v39   ;;  %450 = vperm.xlu0 %1437, %v324_v40  }
  0x5f   : > { %475 = vperm.xlu2 %1439, %v329_v41  }
  0x60   : > { %470 = vperm.xlu1 %1438, %v328_v42   ;;  %465 = vperm.xlu0 %1437, %v327_v43  }
  0x64   : > { %1346 = vmatmul.msk.bf16.gmra.mxu0 %vm649_vm0, %v1374_v44 }
  0x65   : > { %1355 = vmatmul.msk.bf16.gmra.mxu2 %vm649_vm0, %v1383_v45  ;;  %1360 = vmatmul.msk.bf16.gmra.mxu3 %vm649_vm0, %v1388_v46 }
  0x67   : > { %490 = vperm.xlu2 %1439, %v332_v47  }
  0x68   : > { %485 = vperm.xlu1 %1438, %v331_v48   ;;  %480 = vperm.xlu0 %1437, %v330_v49  }
  0x6f   : > { %505 = vperm.xlu2 %1439, %v335_v50  }
  0x70   : > { %500 = vperm.xlu1 %1438, %v334_v51   ;;  %495 = vperm.xlu0 %1437, %v333_v52  }
  0x74   : > { %1347 = vmatmul.msk.bf16.gmra.mxu0 %vm649_vm0, %v1375_v53 }
  0x75   : > { %1361 = vmatmul.msk.bf16.gmra.mxu3 %vm649_vm0, %v1389_v54 }
  0x77   : > { %520 = vperm.xlu2 %1439, %v338_v55  }
  0x78   : > { %515 = vperm.xlu1 %1438, %v337_v56   ;;  %510 = vperm.xlu0 %1437, %v336_v57  }
  0x79   : > { %v366_v58 = vpop.permute.xlu2 %365 }
  0x7f   : > { %535 = vperm.xlu2 %1439, %v341_v59  }
  0x80   : > { %530 = vperm.xlu1 %1438, %v340_v60   ;;  %525 = vperm.xlu0 %1437, %v339_v61  }
  0x81   : > { %v1834_v63 = vpop.permute.xlu2 %370 }
  0x84   : > { %1348 = vmatmul.msk.bf16.gmra.mxu0 %vm649_vm0, %v1376_v62 }
  0x88   : > { %540 = vperm.xlu0 %1437, %v342_v0  }
  0x89   : > { %v1840_v1 = vpop.permute.xlu2 %385 }
  0x91   : > { %v1842_v2 = vpop.permute.xlu2 %400 }
  0x92   : > { %v356_v3 = vpop.permute.xlu1 %355  ;;  %v346_v4 = vpop.permute.xlu0 %345 }
  0x99   : > { %v416_v5 = vpop.permute.xlu2 %415 }
  0x9a   : > { %v361_v6 = vpop.permute.xlu1 %360  ;;  %v351_v7 = vpop.permute.xlu0 %350 }
  0xa1   : > { %v719_v8 = vpop.f32.mrf.mxu0  ;;  %v754_v9 = vpop.f32.mrf.mxu1 }
  0xa2   : > { %v1844_v10 = vadd.f32 %v719_v8, %v346_v4  ;;  %v431_v11 = vpop.permute.xlu2 %430  ;;  %v1846_v12 = vpop.permute.xlu1 %380  ;;  %v1864_v32 = vadd.f32 %v754_v9, %v416_v5 }
  0xa3   : > { %v376_v13 = vpop.permute.xlu0 %375 }
  0xa8   : > { %v764_v14 = vpop.f32.mrf.mxu2  ;;  %v1848_v15 = vpop.f32.mrf.mxu3 }
  0xa9   : > { %v721_v16 = vpop.f32.mrf.mxu0  ;;  %v756_v17 = vpop.f32.mrf.mxu1 }
  0xaa   : > { %v1850_v18 = vadd.f32 %v721_v16, %v351_v7  ;;  %v446_v19 = vpop.permute.xlu2 %445  ;;  %v1852_v20 = vpop.permute.xlu1 %395 }
  0xab   : > { %v1854_v21 = vpop.permute.xlu0 %390 }
  0xb0   : > { %v766_v22 = vpop.f32.mrf.mxu2  ;;  %v791_v23 = vpop.f32.mrf.mxu3 }
  0xb1   : > { %v724_v24 = vpop.f32.mrf.mxu0  ;;  %v759_v25 = vpop.f32.mrf.mxu1 }
  0xb2   : > { %v1856_v26 = vadd.f32 %v724_v24, %v356_v3  ;;  %v461_v27 = vpop.permute.xlu2 %460  ;;  %v1858_v28 = vpop.permute.xlu1 %410 }
  0xb3   : > { %v1860_v29 = vpop.permute.xlu0 %405 }
  0xb8   : > { %v769_v30 = vpop.f32.mrf.mxu2  ;;  %v1862_v31 = vpop.f32.mrf.mxu3 }
  0xb9   : > { %v1866_v33 = vadd.f32 %v769_v30, %v446_v19  ;;  %v726_v34 = vpop.f32.mrf.mxu0  ;;  %v761_v35 = vpop.f32.mrf.mxu1 }
  0xba   : > { %v1868_v36 = vadd.f32 %v726_v34, %v361_v6  ;;  %v1870_v37 = vadd.f32 %v761_v35, %v431_v11  ;;  %v1872_v38 = vpop.permute.xlu2 %475  ;;  %v426_v39 = vpop.permute.xlu1 %425 }
  0xbb   : > { %v829_v40 = vmax.f32 %v1866_v33, %v1864_v32  ;;  %v421_v41 = vpop.permute.xlu0 %420  ;;  %v1877_v43 = vadd.f32 %v759_v25, %v426_v39 }
  0xbc   : > { %v1882_v51 = vadd.f32 %v756_v17, %v421_v41 }
  0xbd   : > { %v833_v42 = vmax.f32 %v829_v40, %v1870_v37 }
  0xbf   : > { %v837_v46 = vmax.f32 %v833_v42, %v1877_v43 }
  0xc0   : > { %v771_v44 = vpop.f32.mrf.mxu2  ;;  %v796_v45 = vpop.f32.mrf.mxu3 }
  0xc1   : > { %v729_v47 = vpop.f32.mrf.mxu0  ;;  %v841_v55 = vmax.f32 %v837_v46, %v1882_v51 }
  0xc2   : > { %v1880_v48 = vadd.f32 %v729_v47, %v366_v58  ;;  %v491_v49 = vpop.permute.xlu2 %490  ;;  %v441_v50 = vpop.permute.xlu1 %440 }
  0xc3   : > { %v1884_v52 = vadd.f32 %v791_v23, %v491_v49  ;;  %v436_v53 = vpop.permute.xlu0 %435  ;;  %v1890_v60 = vadd.f32 %v766_v22, %v441_v50 }
  0xc4   : > { %v819_v54 = vmax.f32 %v1844_v10, %v1880_v48  ;;  %v1893_v4 = vadd.f32 %v764_v14, %v436_v53 }
  0xc5   : > { %v845_v56 = vmax.f32 %v841_v55, %v1884_v52 }
  0xc7   : > { %v849_v0 = vmax.f32 %v845_v56, %v1890_v60 }
  0xc8   : > { %v774_v57 = vpop.f32.mrf.mxu2  ;;  %v799_v59 = vpop.f32.mrf.mxu3 }
  0xc9   : > { %v731_v58 = vpop.f32.mrf.mxu0  ;;  %v853_v6 = vmax.f32 %v849_v0, %v1893_v4 }
  0xca   : > { %v506_v61 = vpop.permute.xlu2 %505  ;;  %v456_v62 = vpop.permute.xlu1 %455 }
  0xcb   : > { %v451_v3 = vpop.permute.xlu0 %450  ;;  %v1895_v5 = vadd.f32 %v799_v59, %v506_v61  ;;  %v1901_v19 = vadd.f32 %v774_v57, %v456_v62 }
  0xcc   : > { %v1906_v24 = vadd.f32 %v771_v44, %v451_v3  ;;  %v1933_v3 = vadd.f32 %v731_v58, %v1834_v63 }
  0xcd   : > { %v830_v9 = vmax.f32 %v1895_v5, %v853_v6 }
  0xcf   : > { %v834_v14 = vmax.f32 %v830_v9, %v1901_v19 }
  0xd0   : > { %v776_v7 = vpop.f32.mrf.mxu2  ;;  %v801_v8 = vpop.f32.mrf.mxu3 }
  0xd1   : > { %v734_v11 = vpop.f32.mrf.mxu0  ;;  %v838_v34 = vmax.f32 %v834_v14, %v1906_v24  ;;  %v1912_v40 = vadd.f32 %v776_v7, %v461_v27  ;;  %v820_v14 = vmax.f32 %v1850_v18, %v1933_v3 }
  0xd2   : > { %v1899_v16 = vadd.f32 %v734_v11, %v376_v13  ;;  %v471_v17 = vpop.permute.xlu1 %470  ;;  %v521_v56 = vpop.permute.xlu2 %520 }
  0xd3   : > { %v466_v22 = vpop.permute.xlu0 %465  ;;  %v842_v44 = vmax.f32 %v838_v34, %v1912_v40 }
  0xd4   : > { %v821_v23 = vmax.f32 %v1856_v26, %v1899_v16 }
  0xd8   : > { %v779_v25 = vpop.f32.mrf.mxu2  ;;  %v804_v30 = vpop.f32.mrf.mxu3 }
  0xd9   : > { %v736_v35 = vpop.f32.mrf.mxu0  ;;  %v1914_v41 = vadd.f32 %v779_v25, %v466_v22 }
  0xda   : > { %v1910_v39 = vadd.f32 %v736_v35, %v1846_v12  ;;  %v486_v13 = vpop.permute.xlu1 %485 }
  0xdb   : > { %v481_v42 = vpop.permute.xlu0 %480  ;;  %v1920_v47 = vadd.f32 %v1848_v15, %v486_v13  ;;  %v846_v49 = vmax.f32 %v842_v44, %v1914_v41 }
  0xdc   : > { %v822_v46 = vmax.f32 %v1868_v36, %v1910_v39 }
  0xdd   : > { %v850_v12 = vmax.f32 %v846_v49, %v1920_v47 }
  0xe0   : > { %v781_v50 = vpop.f32.mrf.mxu2  ;;  %v806_v53 = vpop.f32.mrf.mxu3 }
  0xe1   : > { %v1924_v55 = vadd.f32 %v781_v50, %v471_v17  ;;  %v739_v27 = vpop.f32.mrf.mxu0  ;;  %v1927_v61 = vadd.f32 %v806_v53, %v521_v56 }
  0xe2   : > { %v501_v57 = vpop.permute.xlu1 %500 }
  0xe3   : > { %v854_v59 = vmax.f32 %v850_v12, %v1924_v55  ;;  %v1929_v62 = vadd.f32 %v796_v45, %v501_v57  ;;  %v496_v0 = vpop.permute.xlu0 %495 }
  0xe4   : > { %v1937_v7 = vadd.f32 %v1862_v31, %v496_v0 }
  0xe5   : > { %v856_v15 = vmax.f32 %v1927_v61, %v854_v59 }
  0xe7   : > { %v831_v6 = vmax.f32 %v1929_v62, %v856_v15 }
  0xe8   : > { %v784_v9 = vpop.f32.mrf.mxu2  ;;  %v809_v11 = vpop.f32.mrf.mxu3 }
  0xe9   : > { %v835_v17 = vmax.f32 %v831_v6, %v1937_v7  ;;  %v1941_v22 = vadd.f32 %v784_v9, %v1872_v38  ;;  %v741_v45 = vpop.f32.mrf.mxu0 }
  0xea   : > { %v1946_v25 = vadd.f32 %v741_v45, %v1854_v21  ;;  %v516_v63 = vpop.permute.xlu1 %515 }
  0xeb   : > { %v839_v58 = vmax.f32 %v835_v17, %v1941_v22  ;;  %v1949_v34 = vadd.f32 %v804_v30, %v516_v63  ;;  %v511_v31 = vpop.permute.xlu0 %510 }
  0xec   : > { %v824_v35 = vmax.f32 %v820_v14, %v1946_v25  ;;  %v1953_v44 = vadd.f32 %v801_v8, %v511_v31 }
  0xed   : > { %v843_v13 = vmax.f32 %v839_v58, %v1949_v34  ;;  %v740_v58 = vadd.f32 %v739_v27, %v1840_v1 }
  0xef   : > { %v847_v38 = vmax.f32 %v843_v13, %v1953_v44 }
  0xf0   : > { %v786_v49 = vpop.f32.mrf.mxu2  ;;  %v811_v50 = vpop.f32.mrf.mxu3 }
  0xf1   : > { %v1956_v53 = vadd.f32 %v786_v49, %v481_v42  ;;  %v744_v21 = vpop.f32.mrf.mxu0  ;;  %v536_v42 = vpop.permute.xlu2 %535 }
  0xf2   : > { %v1959_v12 = vadd.f32 %v744_v21, %v1852_v20  ;;  %v531_v56 = vpop.permute.xlu1 %530 }
  0xf3   : > { %v851_v30 = vmax.f32 %v847_v38, %v1956_v53  ;;  %v526_v59 = vpop.permute.xlu0 %525  ;;  %v1963_v15 = vadd.f32 %v811_v50, %v531_v56  ;;  %v823_v50 = vmax.f32 %v819_v54, %v740_v58 }
  0xf4   : > { %v825_v57 = vmax.f32 %v821_v23, %v1959_v12  ;;  %v1966_v6 = vadd.f32 %v809_v11, %v526_v59 }
  0xf6   : > { %v832_v0 = vmax.f32 %v825_v57, %v851_v30 }
  0xf8   : > { %v836_v8 = vmax.f32 %v832_v0, %v1963_v15  ;;  %v814_v9 = vpop.f32.mrf.mxu3 }
  0xf9   : > { %v746_v17 = vpop.f32.mrf.mxu0  ;;  %v1969_v20 = vadd.f32 %v814_v9, %v536_v42 }
  0xfa   : > { %v840_v45 = vmax.f32 %v836_v8, %v1966_v6  ;;  %v747_v14 = vadd.f32 %v746_v17, %v1842_v2 }
  0xfb   : > { %v541_v13 = vpop.permute.xlu0 %540 }
  0xfc   : > { %v844_v63 = vmax.f32 %v840_v45, %v1969_v20  ;;  %v826_v23 = vmax.f32 %v822_v46, %v747_v14 }
  0xfe   : > { %v848_v31 = vmax.f32 %v844_v63, %v826_v23 }
 0x100   : > { %v816_v38 = vpop.f32.mrf.mxu3 }
 0x101   : > { %v1974_v49 = vadd.f32 %v816_v38, %v541_v13  ;;  %v749_v11 = vpop.f32.mrf.mxu0 }
 0x102   : > { %v1980_v21 = vadd.f32 %v749_v11, %v1860_v29 }
 0x103   : > { %v852_v2 = vmax.f32 %v848_v31, %v1974_v49 }
 0x104   : > { %v827_v56 = vmax.f32 %v823_v50, %v1980_v21 }
 0x106   : > { %v855_v46 = vmax.f32 %v827_v56, %v852_v2 }
 0x109   : > { %v751_v30 = vpop.f32.mrf.mxu0 }
 0x10a   : > { %v1985_v1 = vadd.f32 %v751_v30, %v1858_v28 }
 0x10c   : > { %v828_v27 = vmax.f32 %v824_v35, %v1985_v1 }
 0x10e   : > { %v857_v57 = vmax.f32 %v855_v46, %v828_v27 }
 0x110   : > { %v858_v59 = vrot.slane %v857_v57, 4 }
 0x112   : > { %v859_v0 = vmax.f32 %v857_v57, %v858_v59 }
 0x114   : > { %v860_v8 = vrot.slane %v859_v0, 2 }
 0x116   : > { %v861_v9 = vmax.f32 %v859_v0, %v860_v8 }
 0x118   : > { %v862_v54 = vrot.slane %v861_v9, 1 }
 0x11a   : > { %v1988_v42 = vmax.f32 %v861_v9, %v862_v54 }
 0x11c   : > { %v864_v29 = vsub.f32 %v1844_v10, %v1988_v42  ;;  %v865_v17 = vsub.f32 %v1850_v18, %v1988_v42  ;;  %v866_v28 = vsub.f32 %v1856_v26, %v1988_v42  ;;  %v867_v35 = vsub.f32 %v1868_v36, %v1988_v42 }
 0x11d   : > { %v868_v45 = vsub.f32 %v1880_v48, %v1988_v42  ;;  %v870_v63 = vsub.f32 %v1899_v16, %v1988_v42  ;;  %v871_v23 = vsub.f32 %v1910_v39, %v1988_v42  ;;  %v873_v10 = vsub.f32 %v1946_v25, %v1988_v42 }
 0x11e   : > { %v874_v18 = vsub.f32 %v1959_v12, %v1988_v42  ;;  %v879_v26 = vsub.f32 %v1882_v51, %v1988_v42  ;;  %v869_v36 = vsub.f32 %v1933_v3, %v1988_v42  ;;  %v889_v48 = vsub.f32 %v1924_v55, %v1988_v42 }
 0x11f   : > { %v904_v31 = vmul.f32 1.442695, %v864_v29  ;;  %v906_v16 = vmul.f32 1.442695, %v865_v17  ;;  %v908_v13 = vmul.f32 1.442695, %v866_v28  ;;  %v872_v39 = vsub.f32 %v740_v58, %v1988_v42 }
 0x120   : > { %v910_v38 = vmul.f32 1.442695, %v867_v35  ;;  %v912_v25 = vmul.f32 1.442695, %v868_v45  ;;  %v914_v11 = vmul.f32 1.442695, %v869_v36  ;;  %v875_v51 = vsub.f32 %v747_v14, %v1988_v42 }
 0x121   : > { %1440 = vpow2.f32 %v904_v31  ;;  %v916_v12 = vmul.f32 1.442695, %v870_v63  ;;  %v918_v50 = vmul.f32 1.442695, %v871_v23  ;;  %v920_v3 = vmul.f32 1.442695, %v872_v39 }
 0x122   : > { %1442 = vpow2.f32 %v906_v16  ;;  %v922_v2 = vmul.f32 1.442695, %v873_v10  ;;  %v878_v46 = vsub.f32 %v1864_v32, %v1988_v42  ;;  %v924_v58 = vmul.f32 1.442695, %v874_v18 }
 0x123   : > { %1444 = vpow2.f32 %v908_v13  ;;  %v926_v27 = vmul.f32 1.442695, %v875_v51  ;;  %v876_v14 = vsub.f32 %v1980_v21, %v1988_v42  ;;  %v897_v0 = vsub.f32 %v1953_v44, %v1988_v42 }
 0x124   : > { %1446 = vpow2.f32 %v910_v38  ;;  %v877_v32 = vsub.f32 %v1985_v1, %v1988_v42  ;;  %v932_v54 = vmul.f32 1.442695, %v878_v46  ;;  %v934_v17 = vmul.f32 1.442695, %v879_v26 }
 0x125   : > { %1448 = vpow2.f32 %v912_v25  ;;  %v928_v35 = vmul.f32 1.442695, %v876_v14  ;;  %v880_v10 = vsub.f32 %v1877_v43, %v1988_v42  ;;  %v881_v26 = vsub.f32 %v1870_v37, %v1988_v42 }
 0x126   : > { %1450 = vpow2.f32 %v914_v11  ;;  %v930_v23 = vmul.f32 1.442695, %v877_v32  ;;  %v882_v31 = vsub.f32 %v1893_v4, %v1988_v42  ;;  %v888_v16 = vsub.f32 %v1914_v41, %v1988_v42 }
 0x127   : > { %v2016_v56 = vpop.eup %1440  ;;  %1452 = vpow2.f32 %v916_v12  ;;  %v936_v11 = vmul.f32 1.442695, %v880_v10  ;;  %v954_v32 = vmul.f32 1.442695, %v889_v48  ;;  %v895_v55 = vsub.f32 %v1929_v62, %v1988_v42 }
 0x128   : > { %v2020_v30 = vpop.eup %1442  ;;  %1454 = vpow2.f32 %v918_v50  ;;  %v883_v50 = vsub.f32 %v1890_v60, %v1988_v42  ;;  %v952_v46 = vmul.f32 1.442695, %v888_v16  ;;  %v885_v62 = vsub.f32 %v1906_v24, %v1988_v42 }
 0x129   : > { %v2022_v57 = vpop.eup %1444  ;;  %1456 = vpow2.f32 %v920_v3  ;;  %v984_v59 = vadd.f32 %v2020_v30, %v2016_v56  ;;  %v1032_v41 = vpack.c.bf16 %v2020_v30, %v2016_v56  ;;  %v938_v3 = vmul.f32 1.442695, %v881_v26 }
 0x12a   : > { %v2030_v8 = vpop.eup %1446  ;;  %1458 = vpow2.f32 %v922_v2  ;;  %v890_v16 = vsub.f32 %v1941_v22, %v1988_v42  ;;  %v970_v24 = vmul.f32 1.442695, %v897_v0  ;;  %v900_v0 = vsub.f32 %v1966_v6, %v1988_v42 }
 0x12b   : > { %v2034_v9 = vpop.eup %1448  ;;  %1460 = vpow2.f32 %v924_v58  ;;  %v985_v29 = vadd.f32 %v2022_v57, %v984_v59  ;;  %v1033_v4 = vpack.c.bf16 %v2030_v8, %v2022_v57  ;;  %v940_v59 = vmul.f32 1.442695, %v882_v31 }
 0x12c   : > { %v2037_v21 = vpop.eup %1450  ;;  %1462 = vpow2.f32 %v926_v27  ;;  %v892_v27 = vsub.f32 %v1920_v47, %v1988_v42 }
 0x12d   : > { %v2039_v28 = vpop.eup %1452  ;;  %v986_v45 = vadd.f32 %v2030_v8, %v985_v29  ;;  %1464 = vpow2.f32 %v932_v54  ;;  %v1034_v37 = vpack.c.bf16 %v2037_v21, %v2034_v9  ;;  %v893_v54 = vsub.f32 %v1884_v52, %v1988_v42 }
 0x12e   : > { %v2042_v63 = vpop.eup %1454  ;;  %1466 = vpow2.f32 %v934_v17  ;;  %v894_v17 = vsub.f32 %v1937_v7, %v1988_v42  ;;  %v896_v52 = vsub.f32 %v1895_v5, %v1988_v42  ;;  %v884_v7 = vsub.f32 %v1866_v33, %v1988_v42 }
 0x12f   : > { %v2044_v1 = vpop.eup %1456  ;;  %v987_v18 = vadd.f32 %v2034_v9, %v986_v45  ;;  %1468 = vpow2.f32 %v928_v35  ;;  %v1035_v39 = vpack.c.bf16 %v2042_v63, %v2039_v28  ;;  %v942_v45 = vmul.f32 1.442695, %v883_v50 }
 0x130   : > { %v2049_v36 = vpop.eup %1458  ;;  %1470 = vpow2.f32 %v930_v23  ;;  %v960_v23 = vmul.f32 1.442695, %v892_v27  ;;  %v962_v10 = vmul.f32 1.442695, %v893_v54  ;;  %v964_v26 = vmul.f32 1.442695, %v894_v17 }
 0x131   : > { %v2057_v13 = vpop.eup %1460  ;;  %v988_v43 = vadd.f32 %v2037_v21, %v987_v18  ;;  %v1036_v38 = vpack.c.bf16 %v2049_v36, %v2044_v1  ;;  %1472 = vpow2.f32 %v936_v11  ;;  %v966_v5 = vmul.f32 1.442695, %v895_v55 }
 0x132   : > { %v2064_v25 = vpop.eup %1462  ;;  %1474 = vpow2.f32 %v938_v3  ;;  %v968_v33 = vmul.f32 1.442695, %v896_v52  ;;  %v944_v50 = vmul.f32 1.442695, %v884_v7  ;;  %v956_v27 = vmul.f32 1.442695, %v890_v16 }
 0x133   : > { %v989_v12 = vadd.f32 %v2039_v28, %v988_v43  ;;  %v1037_v51 = vpack.c.bf16 %v2064_v25, %v2057_v13  ;;  %v2077_v2 = vpop.eup %1464  ;;  %1476 = vpow2.f32 %v952_v46  ;;  %v898_v55 = vsub.f32 %v1949_v34, %v1988_v42 }
 0x134   : > { %v2082_v14 = vpop.eup %1466  ;;  %1478 = vpow2.f32 %v954_v32 }
 0x135   : > { %v990_v58 = vadd.f32 %v2042_v63, %v989_v12  ;;  %v1469_v60 = vpop.eup %1468  ;;  %v1039_v47 = vpack.c.bf16 %v2082_v14, %v2077_v2  ;;  %1480 = vpow2.f32 %v940_v59 }
 0x136   : > { %v1471_v35 = vpop.eup %1470  ;;  %1482 = vpow2.f32 %v942_v45 }
 0x137   : > { %v991_v29 = vadd.f32 %v2044_v1, %v990_v58  ;;  %1066 = vmatpush.bf16.msrb.mxu1 %v1039_v47  ;;  %v1038_v31 = vpack.c.bf16 %v1471_v35, %v1469_v60  ;;  %v2106_v43 = vpop.eup %1472  ;;  %1484 = vpow2.f32 %v960_v23  ;;  %v946_v58 = vmul.f32 1.442695, %v885_v62 }
 0x138   : > { %v2109_v12 = vpop.eup %1474  ;;  %1486 = vpow2.f32 %v962_v10  ;;  %v887_v47 = vsub.f32 %v1912_v40, %v1988_v42  ;;  %v899_v40 = vsub.f32 %v1927_v61, %v1988_v42  ;;  %v972_v10 = vmul.f32 1.442695, %v898_v55 }
 0x139   : > { %v992_v48 = vadd.f32 %v2049_v36, %v991_v29  ;;  %v2116_v22 = vpop.eup %1476  ;;  %1488 = vpow2.f32 %v964_v26  ;;  %v886_v29 = vsub.f32 %v1901_v19, %v1988_v42  ;;  %v976_v19 = vmul.f32 1.442695, %v900_v0  ;;  %v1031_v0 = vld [vmem:[%s2238_s3 + $0x8] sm:$0x7] }
 0x13a   : > { %v2120_v46 = vpop.eup %1478  ;;  %1490 = vpow2.f32 %v966_v5  ;;  %v950_v1 = vmul.f32 1.442695, %v887_v47 }
 0x13b   : > { %v993_v18 = vadd.f32 %v2057_v13, %v992_v48  ;;  %1067 = vmatpush.bf16.msrb.mxu1 %v1038_v31  ;;  %v891_v13 = vsub.f32 %v1956_v53, %v1988_v42  ;;  %v903_v53 = vsub.f32 %v1974_v49, %v1988_v42  ;;  %v2124_v59 = vpop.eup %1480  ;;  %1492 = vpow2.f32 %v968_v33 }
 0x13c   : > { %v2130_v32 = vpop.eup %1482  ;;  %1494 = vpow2.f32 %v970_v24  ;;  %v948_v23 = vmul.f32 1.442695, %v886_v29  ;;  %v1030_v24 = vld [vmem:[%s2238_s3] sm:$0x77] }
 0x13d   : > { %v994_v11 = vadd.f32 %v2064_v25, %v993_v18  ;;  %v902_v25 = vsub.f32 %v1969_v20, %v1988_v42  ;;  %v1044_v20 = vpack.c.bf16 %v2120_v46, %v2116_v22  ;;  %v958_v54 = vmul.f32 1.442695, %v891_v13  ;;  %v2134_v49 = vpop.eup %1484 }
 0x13e   : > { %1496 = vpow2.f32 %v944_v50  ;;  %v974_v18 = vmul.f32 1.442695, %v899_v40  ;;  %v1054_v9 = vunpack.c.l.b16 %v1030_v24  ;;  %v1041_v56 = vpack.c.bf16 %v2130_v32, %v2124_v59 }
 0x13f   : > { %v995_v3 = vadd.f32 %v1469_v60, %v994_v11  ;;  %1068 = vmatpush.bf16.msrb.mxu1 %v1037_v51  ;;  %v901_v60 = vsub.f32 %v1963_v15, %v1988_v42  ;;  %v980_v17 = vmul.f32 1.442695, %v902_v25  ;;  %v2139_v51 = vpop.eup %1486  ;;  %1498 = vpow2.f32 %v946_v58 }
 0x140   : > { %v2143_v45 = vpop.eup %1488  ;;  %1500 = vpow2.f32 %v956_v27  ;;  %v1046_v62 = vpack.c.bf16 %v2139_v51, %v2134_v49  ;;  %v1057_v57 = vpack.c.b16 %v1054_v9, %v1054_v9  ;;  %v1055_v30 = vunpack.c.h.b16 %v1030_v24 }
 0x141   : > { %v996_v44 = vadd.f32 %v1471_v35, %v995_v3  ;;  %v982_v35 = vmul.f32 1.442695, %v903_v53  ;;  %1502 = vpow2.f32 %v958_v54  ;;  %v978_v48 = vmul.f32 1.442695, %v901_v60 }
 0x142   : > { %1504 = vpow2.f32 %v980_v17  ;;  %v1056_v60 = vunpack.c.l.b16 %v1031_v0 }
 0x143   : > { %v997_v6 = vadd.f32 %v2077_v2, %v996_v44  ;;  %1069 = vmatpush.bf16.msrb.mxu1 %v1036_v38  ;;  %v2151_v2 = vpop.eup %1490  ;;  %1506 = vpow2.f32 %v982_v35 }
 0x144   : > { %v2155_v52 = vpop.eup %1492  ;;  %v1047_v34 = vpack.c.bf16 %v2151_v2, %v2143_v45  ;;  %1508 = vpow2.f32 %v976_v19  ;;  %v1059_v17 = vpack.c.b16 %v1056_v60, %v1056_v60 }
 0x145   : > { %v998_v15 = vadd.f32 %v2082_v14, %v997_v6  ;;  %v2160_v7 = vpop.eup %1494  ;;  %1510 = vpow2.f32 %v978_v48 }
 0x146   : > { %v1497_v36 = vpop.eup %1496  ;;  %1079 = vmatpush.bf16.msrb.mxu2 %v1047_v34  ;;  %v1048_v61 = vpack.c.bf16 %v2160_v7, %v2155_v52  ;;  %1512 = vpow2.f32 %v948_v23 }
 0x147   : > { %v999_v14 = vadd.f32 %v2106_v43, %v998_v15  ;;  %1070 = vmatpush.bf16.msrb.mxu1 %v1035_v39  ;;  %v1499_v42 = vpop.eup %1498  ;;  %1514 = vpow2.f32 %v950_v1 }
 0x148   : > { %v1501_v26 = vpop.eup %1500  ;;  %1516 = vpow2.f32 %v972_v10  ;;  %v1042_v6 = vpack.c.bf16 %v1499_v42, %v1497_v36 }
 0x149   : > { %v1000_v38 = vadd.f32 %v2109_v12, %v999_v14  ;;  %v1503_v16 = vpop.eup %1502  ;;  %1518 = vpow2.f32 %v974_v18 }
 0x14a   : > { %v2171_v5 = vpop.eup %1504  ;;  %1080 = vmatpush.bf16.msrb.mxu2 %v1046_v62  ;;  %v1045_v13 = vpack.c.bf16 %v1503_v16, %v1501_v26 }
 0x14b   : > { %v1001_v31 = vadd.f32 %v2124_v59, %v1000_v38  ;;  %1071 = vmatpush.bf16.msrb.mxu1 %v1034_v37  ;;  %v1507_v28 = vpop.eup %1506 }
 0x14c   : > { %v1509_v63 = vpop.eup %1508  ;;  %v1051_v33 = vpack.c.bf16 %v1507_v28, %v2171_v5 }
 0x14d   : > { %v1002_v11 = vadd.f32 %v2130_v32, %v1001_v31  ;;  %v1511_v50 = vpop.eup %1510 }
 0x14e   : > { %v1513_v3 = vpop.eup %1512  ;;  %1096 = vmatpush.bf16.msrb.mxu3 %v1051_v33  ;;  %1081 = vmatpush.bf16.msrb.mxu2 %v1045_v13  ;;  %v1050_v27 = vpack.c.bf16 %v1511_v50, %v1509_v63 }
 0x14f   : > { %v1003_v39 = vadd.f32 %v1497_v36, %v1002_v11  ;;  %v1515_v58 = vpop.eup %1514  ;;  %1072 = vmatpush.bf16.msrb.mxu1 %v1033_v4 }
 0x150   : > { %v1517_v21 = vpop.eup %1516  ;;  %v1043_v54 = vpack.c.bf16 %v1515_v58, %v1513_v3 }
 0x151   : > { %v1004_v25 = vadd.f32 %v1499_v42, %v1003_v39  ;;  %v1519_v53 = vpop.eup %1518 }
 0x152   : > { %1097 = vmatpush.bf16.msrb.mxu3 %v1050_v27  ;;  %1082 = vmatpush.bf16.msrb.mxu2 %v1044_v20  ;;  %v1049_v4 = vpack.c.bf16 %v1519_v53, %v1517_v21 }
 0x153   : > { %v1005_v37 = vadd.f32 %v1513_v3, %v1004_v25  ;;  %1073 = vmatpush.bf16.msrb.mxu1 %v1032_v41  ;;  %v1040_v41 = vpack.c.bf16 %v2109_v12, %v2106_v43 }
 0x155   : > { %v1006_v44 = vadd.f32 %v1515_v58, %v1005_v37 }
 0x156   : > { %1098 = vmatpush.bf16.msrb.mxu3 %v1049_v4  ;;  %1083 = vmatpush.bf16.msrb.mxu2 %v1043_v54 }
 0x157   : > { %v1007_v8 = vadd.f32 %v2116_v22, %v1006_v44  ;;  %1074 = vmatmul.bf16.vlgmr.msrb.gmra.mxu1 %v1057_v57  ;;  %v1058_v22 = vpack.c.b16 %v1055_v30, %v1055_v30 }
 0x159   : > { %v1008_v29 = vadd.f32 %v2120_v46, %v1007_v8 }
 0x15a   : > { %1099 = vmatpush.bf16.msrb.mxu3 %v1048_v61  ;;  %1084 = vmatpush.bf16.msrb.mxu2 %v1042_v6 }
 0x15b   : > { %v1009_v20 = vadd.f32 %v1501_v26, %v1008_v29 }
 0x15d   : > { %v1010_v47 = vadd.f32 %v1503_v16, %v1009_v20  ;;  %1362 = vmatmul.msk.bf16.vlgmr.msrb.gmra.mxu3 %vm1062_vm1, %v1059_v17 }
 0x15e   : > { %1085 = vmatpush.bf16.msrb.mxu2 %v1041_v56 }
 0x15f   : > { %v1011_v46 = vadd.f32 %v2134_v49, %v1010_v47 }
 0x161   : > { %v1012_v35 = vadd.f32 %v2139_v51, %v1011_v46 }
 0x162   : > { %1086 = vmatpush.bf16.msrb.mxu2 %v1040_v41 }
 0x163   : > { %v1013_v15 = vadd.f32 %v2143_v45, %v1012_v35 }
 0x165   : > { %1087 = vmatmul.bf16.vlgmr.msrb.gmra.mxu2 %v1058_v22  ;;  %v1014_v55 = vadd.f32 %v2151_v2, %v1013_v15 }
 0x167   : > { %v1015_v59 = vadd.f32 %v2155_v52, %v1014_v55 }
 0x169   : > { %v1016_v32 = vadd.f32 %v2160_v7, %v1015_v59 }
 0x16b   : > { %v1017_v19 = vadd.f32 %v1517_v21, %v1016_v32 }
 0x16d   : > { %v1018_v40 = vadd.f32 %v1519_v53, %v1017_v19 }
 0x16f   : > { %v1019_v43 = vadd.f32 %v1509_v63, %v1018_v40 }
 0x171   : > { %v1020_v12 = vadd.f32 %v1511_v50, %v1019_v43 }
 0x173   : > { %v1021_v49 = vadd.f32 %v2171_v5, %v1020_v12 }
 0x175   : > { %v1022_v51 = vadd.f32 %v1507_v28, %v1021_v49 }
 0x177   : > { %v1023_v45 = vrot.slane %v1022_v51, 4 }
 0x179   : > { %v1024_v48 = vadd.f32 %v1023_v45, %v1022_v51 }
 0x17b   : > { %v1025_v23 = vrot.slane %v1024_v48, 2 }
 0x17d   : > { %v1026_v52 = vadd.f32 %v1025_v23, %v1024_v48 }
 0x17f   : > { %v1027_v34 = vrot.slane %v1026_v52, 1 }
 0x181   : > { %v1028_v1 = vadd.f32 %v1027_v34, %v1026_v52 }
 0x183   : > { %1520 = vrcp.f32 %v1028_v1 }
 0x189   : > { %v1521_v42 = vpop.eup %1520 }
 0x1d4   : > { %v1075_v2 = vpop.f32.mrf.mxu1 }
 0x1dc   : > { %v1077_v14 = vpop.f32.mrf.mxu1 }
 0x1e0   : > { %v1101_v7 = vpop.f32.mrf.mxu3 }
 0x1e8   : > { %v1088_v36 = vpop.f32.mrf.mxu2  ;;  %v1103_v38 = vpop.f32.mrf.mxu3 }
 0x1e9   : > { %v1089_v10 = vadd.f32 %v1088_v36, %v1075_v2 }
 0x1eb   : > { %v1102_v61 = vadd.f32 %v1101_v7, %v1089_v10 }
 0x1ec   : > { %1111 = sbr.rel (%p2207_p10) target bundleno = 501 (0x1f5), region = 44 }
 0x1ed   : > { %v1105_v18 = vmul.f32 %v1521_v42, %v1102_v61 }
 0x1f0   : > { %v1090_v26 = vpop.f32.mrf.mxu2 }
 0x1f1   : > { %v1114_v31 = vld [vmem:[%s1113_s26] sm:$0x3] }
 0x1f2   : > { %v1115_v62 = vadd.f32 %v1114_v31, %v1105_v18 }
 0x1f4   : > { %1116 = vst [vmem:[%s1113_s26] sm:$0x3] %v1115_v62 }
 0x1f5 PF: > { %s1364_s27 = sadd.s32 4294967295, %s1544_s15 }
 0x1f6   : > { %p1118_p11 = scmp.ge.s32.totalorder %s1364_s27, 0  ;;  %p1119_p12 = scmp.lt.s32.totalorder %s1364_s27, 6 }
 0x1f8   : > { %p1120_p13 = pnand %p1119_p12, %p1118_p11 }
 0x1f9   : > { %s1365_s28 = sshll.u32 (!%p1120_p13), %s1364_s27, 1 }
 0x1fa   : > { %1123 = sbr.rel (%p1120_p13) target bundleno = 516 (0x204), region = 48  ;;  %s1125_s30 = scalar_lea.vmem (!%p1120_p13), %s1626_s29, %s1365_s28 }
 0x1ff   : > { %v1128_v16 = vrot.slane %v1105_v18, 2  ;;  %v1126_v5 = vld [vmem:[%s1125_s30] sm:$0x3] }
 0x201   : > { %v1130_v11 = vadd.f32 %v1128_v16, %v1126_v5 }
 0x203   : > { %1131 = vst [vmem:[%s1125_s30] sm:$0x3] %v1130_v11 }
 0x204 PF: > { %s1366_s5 = sadd.s32 4294967294, %s1544_s15 }
 0x205   : > { %p1133_p0 = scmp.ge.s32.totalorder %s1366_s5, 0  ;;  %p1134_p1 = scmp.lt.s32.totalorder %s1366_s5, 6 }
 0x207   : > { %p1135_p2 = pnand %p1134_p1, %p1133_p0 }
 0x208   : > { %s1367_s6 = sshll.u32 (!%p1135_p2), %s1366_s5, 1 }
 0x209   : > { %1138 = sbr.rel (%p1135_p2) target bundleno = 531 (0x213), region = 52  ;;  %s1140_s7 = scalar_lea.vmem (!%p1135_p2), %s1626_s29, %s1367_s6 }
 0x20e   : > { %v1143_v28 = vrot.slane %v1105_v18, 4  ;;  %v1141_v63 = vld [vmem:[%s1140_s7] sm:$0x3] }
 0x210   : > { %v1145_v39 = vadd.f32 %v1143_v28, %v1141_v63 }
 0x212   : > { %1146 = vst [vmem:[%s1140_s7] sm:$0x3] %v1145_v39 }
 0x213 PF: > { %s14_s19 = sadd.s32 1, %s1560_s19   ;;  %s2241_s15 = smov %s1552_s17 }
 0x214   : > { %p11_p3 = scmp.ge.s32.totalorder %s14_s19, 18   ;;  %s2242_s16 = smov %s1556_s18 }
 0x215   : > { %s2243_s17 = smov %s2246_s20  ;;  %s2244_s18 = smov %s2250_s21 }
 0x216   :  { %13 = sbr.rel (!%p11_p3) target bundleno = 3 (0x3), region = 85 }

</bundles_post_ra>
